<compile_context>
chip_gen: v7x
topology: tpu7x:2x2x1
jax: 0.10.0
libtpu: 0.0.40
codegen_flags: <defaults>
</compile_context>

<pallas_src>
import math
import functools

import jax
import jax.numpy as jnp
from jax import lax
from jax.experimental import pallas as pl
from jax.experimental.pallas import tpu as pltpu


def _round_up(x, m):
    return ((x + m - 1) // m) * m


def _conv2d_ap_kernel(x_ref, w_ref, b_ref, o_ref, p_ref, *, tap_offsets, cin, t_c, sw):
    """One grid step = one image.

    x_ref : (1, Cin, Lp)     zero-padded, spatially-flattened image (VMEM)
    w_ref : (Cout, K)        weight as (Cout, KH*KW*Cin) matrix (VMEM)
    b_ref : (Cout, 1)        bias, f32 (VMEM)
    o_ref : (1, Cout, Tc)    lane-flat output block, Tc % 128 == 0 (VMEM)
    p_ref : (K, Tc)          im2col slab scratch (VMEM)
    """
    x = x_ref[0]                                   # (Cin, Lp)

    # Build the im2col slab: row block i holds the lane-shifted (and, for
    # sw > 1, lane-strided) view of the input for tap i.  Static lane slices
    # only — no reshapes, no per-tap relayouts.
    for i, off in enumerate(tap_offsets):          # static unroll over KH*KW taps
        if sw == 1:
            slab = x[:, off:off + t_c]
        else:
            slab = lax.slice(x, (0, off), (cin, off + (t_c - 1) * sw + 1), (1, sw))
        p_ref[i * cin:(i + 1) * cin, :] = slab

    # One consolidated MXU matmul (K = KH*KW*Cin contraction depth) + epilogue.
    acc = jnp.dot(w_ref[...], p_ref[...], preferred_element_type=jnp.float32)
    acc = acc + b_ref[...]                         # (Cout, 1) broadcast over lanes
    o_ref[0] = acc.astype(o_ref.dtype)             # lane-dense, unmasked stores


def conv2d_ap(x_nchw, weight_oihw, bias_vec, in_shape, out_shape, ksize, stride,
              compute_dtype=None):
    """Forward pass of Conv2dAP.  x_nchw: (N, Cin, H, W) -> (N, Cout, OH, OW)."""
    if isinstance(ksize, int):
        ksize = (ksize, ksize)
    if isinstance(stride, int):
        stride = (stride, stride)
    kh_sz, kw_sz = ksize
    sh, sw = stride

    # Same "auto padding" computation as the PyTorch module's __init__.
    pad_h = int(math.ceil((sh * (out_shape[0] - 1) - in_shape[0] + kh_sz) / 2))
    pad_w = int(math.ceil((sw * (out_shape[1] - 1) - in_shape[1] + kw_sz) / 2))
    assert pad_h >= 0 and pad_w >= 0
    assert pad_h < kh_sz and pad_w < kw_sz

    N, Cin, H, W = x_nchw.shape
    Cout = weight_oihw.shape[0]
    assert Cin == weight_oihw.shape[1]
    assert (H, W) == tuple(in_shape)
    OH, OW = out_shape
    # Mirror the module's forward-time output-shape asserts (nn.Conv2d formula).
    assert (H + 2 * pad_h - kh_sz) // sh + 1 == OH
    assert (W + 2 * pad_w - kw_sz) // sw + 1 == OW

    Hp, Wp = H + 2 * pad_h, W + 2 * pad_w

    # Lane-flat geometry (requires sw | sh*Wp — always true for stride 1 and
    # for square strides).
    assert (sh * Wp) % sw == 0, "unsupported (non-square) stride combination"
    # TODO(synk): strides with sw not dividing sh*Wp need a per-phase gather path.
    RS = (sh * Wp) // sw
    assert RS >= OW
    K = kh_sz * kw_sz * Cin
    t_c = _round_up(OH * RS, 128)                  # computed lanes (128-aligned)
    tap_offsets = tuple(kh * Wp + kw for kh in range(kh_sz) for kw in range(kw_sz))
    lp_needed = max(tap_offsets) + (t_c - 1) * sw + 1
    Lp = _round_up(max(Hp * Wp, lp_needed), 128)

    out_dtype = x_nchw.dtype
    if compute_dtype is None:
        compute_dtype = out_dtype

    # HBM-side glue (no transposes): zero-pad spatially, flatten HW into one
    # lane axis, pad the lane axis so the garbage-tail lanes stay in bounds.
    x_pad = jnp.pad(x_nchw, ((0, 0), (0, 0), (pad_h, pad_h), (pad_w, pad_w)))
    x_flat = jnp.pad(x_pad.reshape(N, Cin, Hp * Wp),
                     ((0, 0), (0, 0), (0, Lp - Hp * Wp))).astype(compute_dtype)

    # Weight (Cout, Cin, KH, KW) -> (Cout, KH*KW*Cin), tap-major to match slab.
    w_mat = jnp.transpose(weight_oihw, (0, 2, 3, 1)).reshape(Cout, K).astype(compute_dtype)
    if bias_vec is None:
        bias_vec = jnp.zeros((Cout,), jnp.float32)
    b = bias_vec.reshape(Cout, 1).astype(jnp.float32)

    kernel = functools.partial(
        _conv2d_ap_kernel, tap_offsets=tap_offsets, cin=Cin, t_c=t_c, sw=sw)

    out_flat = pl.pallas_call(
        kernel,
        out_shape=jax.ShapeDtypeStruct((N, Cout, t_c), out_dtype),
        grid=(N,),
        in_specs=[
            pl.BlockSpec((1, Cin, Lp), lambda n: (n, 0, 0)),
            pl.BlockSpec((Cout, K), lambda n: (0, 0)),   # fetched once, reused
            pl.BlockSpec((Cout, 1), lambda n: (0, 0)),
        ],
        out_specs=pl.BlockSpec((1, Cout, t_c), lambda n: (n, 0, 0)),
        scratch_shapes=[pltpu.VMEM((K, t_c), compute_dtype)],
        compiler_params=pltpu.CompilerParams(dimension_semantics=("parallel",)),
    )(x_flat, w_mat, b)

    # (N, Cout, OH*RS) -> (N, Cout, OH, RS) is a free trailing split; then drop
    # the garbage columns.  Output is already channel-major (NCHW) — no transpose.
    out = out_flat[:, :, :OH * RS].reshape(N, Cout, OH, RS)[:, :, :, :OW]
    return out


if __name__ == "__main__":
    # Module config: in_shape=(16,16), out_shape=(16,16), in_c=4, out_c=8,
    # ksize=3, stride=1, bias=True  ->  auto pad = (1, 1).
    in_shape, out_shape = (16, 16), (16, 16)
    in_c, out_c, ksize, stride = 4, 8, 3, 1
    N = 2

    key = jax.random.PRNGKey(0)
    kx, kw_, kb = jax.random.split(key, 3)

    x = jax.random.normal(kx, (N, in_c, in_shape[0], in_shape[1]), jnp.float32)
    fan_in = in_c * ksize * ksize
    bound = 1.0 / math.sqrt(fan_in)
    weight = jax.random.uniform(
        kw_, (out_c, in_c, ksize, ksize), jnp.float32, minval=-bound, maxval=bound)
    bias = jax.random.uniform(kb, (out_c,), jnp.float32, minval=-bound, maxval=bound)

    # f32 compute path (v5e-style), tight correctness check.
    y = conv2d_ap(x, weight, bias, in_shape, out_shape, ksize, stride)
    jax.block_until_ready(y)

    pad = 1
    y_ref = lax.conv_general_dilated(
        x, weight,
        window_strides=(stride, stride),
        padding=((pad, pad), (pad, pad)),
        dimension_numbers=("NCHW", "OIHW", "NCHW"),
        precision=lax.Precision.HIGHEST,
    ) + bias.reshape(1, out_c, 1, 1)

    assert y.shape == (N, out_c, out_shape[0], out_shape[1])
    assert jnp.allclose(y, y_ref, atol=1e-4, rtol=1e-4)

    # bf16 compute path (v6e/v7x MXU-friendly), f32 accumulation in-kernel.
    y_bf16 = conv2d_ap(x, weight, bias, in_shape, out_shape, ksize, stride,
                       compute_dtype=jnp.bfloat16)
    jax.block_until_ready(y_bf16)
    assert y_bf16.shape == y_ref.shape
    assert jnp.allclose(y_bf16, y_ref, atol=1e-1, rtol=5e-2)

    print("KERNEL_OK")
</pallas_src>

<mosaic_0001>
module attributes {stable_mosaic.version = 11 : i64} {
  func.func @_conv2d_ap_kernel(%arg0: i32, %arg1: memref<1x4x512xf32, #tpu.memory_space<vmem>>, %arg2: memref<8x36xf32, #tpu.memory_space<vmem>>, %arg3: memref<8x1xf32, #tpu.memory_space<vmem>>, %arg4: memref<1x8x384xf32, #tpu.memory_space<vmem>>, %arg5: memref<36x384xf32, #tpu.memory_space<vmem>>) attributes {dimension_semantics = [#tpu.dimension_semantics<parallel>], iteration_bounds = array<i64: 2>, scalar_prefetch = 0 : i64, scratch_operands = 1 : i64, tpu.core_type = #tpu.core_type<tc>, window_params = [{transform_indices = @transform_0, window_bounds = array<i64: 1, 4, 512>}, {pipeline_mode = #tpu.pipeline_mode<synchronous>, transform_indices = @transform_1, window_bounds = array<i64: 8, 36>}, {pipeline_mode = #tpu.pipeline_mode<synchronous>, transform_indices = @transform_2, window_bounds = array<i64: 8, 1>}, {transform_indices = @transform_3, window_bounds = array<i64: 1, 8, 384>}]} {
    %c0 = arith.constant 0 : index
    %c0_0 = arith.constant 0 : index
    %c0_1 = arith.constant 0 : index
    %0 = vector.load %arg1[%c0, %c0_0, %c0_1] : memref<1x4x512xf32, #tpu.memory_space<vmem>>, vector<1x4x512xf32>
    %1 = vector.shape_cast %0 : vector<1x4x512xf32> to vector<4x512xf32>
    %2 = vector.extract_strided_slice %1 {offsets = [0, 0], sizes = [4, 384], strides = [1, 1]} : vector<4x512xf32> to vector<4x384xf32>
    %c0_2 = arith.constant 0 : index
    %c0_3 = arith.constant 0 : index
    %3 = vector.load %arg5[%c0_2, %c0_3] : memref<36x384xf32, #tpu.memory_space<vmem>>, vector<4x384xf32>
    tpu.vector_store %arg5[%c0_2, %c0_3], %2 {strides = array<i32>} : memref<36x384xf32, #tpu.memory_space<vmem>>, vector<4x384xf32>,
    %4 = vector.extract_strided_slice %1 {offsets = [0, 1], sizes = [4, 384], strides = [1, 1]} : vector<4x512xf32> to vector<4x384xf32>
    %c4 = arith.constant 4 : index
    %c0_4 = arith.constant 0 : index
    %5 = vector.load %arg5[%c4, %c0_4] : memref<36x384xf32, #tpu.memory_space<vmem>>, vector<4x384xf32>
    tpu.vector_store %arg5[%c4, %c0_4], %4 {strides = array<i32>} : memref<36x384xf32, #tpu.memory_space<vmem>>, vector<4x384xf32>,
    %6 = vector.extract_strided_slice %1 {offsets = [0, 2], sizes = [4, 384], strides = [1, 1]} : vector<4x512xf32> to vector<4x384xf32>
    %c8 = arith.constant 8 : index
    %c0_5 = arith.constant 0 : index
    %7 = vector.load %arg5[%c8, %c0_5] : memref<36x384xf32, #tpu.memory_space<vmem>>, vector<4x384xf32>
    tpu.vector_store %arg5[%c8, %c0_5], %6 {strides = array<i32>} : memref<36x384xf32, #tpu.memory_space<vmem>>, vector<4x384xf32>,
    %8 = vector.extract_strided_slice %1 {offsets = [0, 18], sizes = [4, 384], strides = [1, 1]} : vector<4x512xf32> to vector<4x384xf32>
    %c12 = arith.constant 12 : index
    %c0_6 = arith.constant 0 : index
    %9 = vector.load %arg5[%c12, %c0_6] : memref<36x384xf32, #tpu.memory_space<vmem>>, vector<4x384xf32>
    tpu.vector_store %arg5[%c12, %c0_6], %8 {strides = array<i32>} : memref<36x384xf32, #tpu.memory_space<vmem>>, vector<4x384xf32>,
    %10 = vector.extract_strided_slice %1 {offsets = [0, 19], sizes = [4, 384], strides = [1, 1]} : vector<4x512xf32> to vector<4x384xf32>
    %c16 = arith.constant 16 : index
    %c0_7 = arith.constant 0 : index
    %11 = vector.load %arg5[%c16, %c0_7] : memref<36x384xf32, #tpu.memory_space<vmem>>, vector<4x384xf32>
    tpu.vector_store %arg5[%c16, %c0_7], %10 {strides = array<i32>} : memref<36x384xf32, #tpu.memory_space<vmem>>, vector<4x384xf32>,
    %12 = vector.extract_strided_slice %1 {offsets = [0, 20], sizes = [4, 384], strides = [1, 1]} : vector<4x512xf32> to vector<4x384xf32>
    %c20 = arith.constant 20 : index
    %c0_8 = arith.constant 0 : index
    %13 = vector.load %arg5[%c20, %c0_8] : memref<36x384xf32, #tpu.memory_space<vmem>>, vector<4x384xf32>
    tpu.vector_store %arg5[%c20, %c0_8], %12 {strides = array<i32>} : memref<36x384xf32, #tpu.memory_space<vmem>>, vector<4x384xf32>,
    %14 = vector.extract_strided_slice %1 {offsets = [0, 36], sizes = [4, 384], strides = [1, 1]} : vector<4x512xf32> to vector<4x384xf32>
    %c24 = arith.constant 24 : index
    %c0_9 = arith.constant 0 : index
    %15 = vector.load %arg5[%c24, %c0_9] : memref<36x384xf32, #tpu.memory_space<vmem>>, vector<4x384xf32>
    tpu.vector_store %arg5[%c24, %c0_9], %14 {strides = array<i32>} : memref<36x384xf32, #tpu.memory_space<vmem>>, vector<4x384xf32>,
    %16 = vector.extract_strided_slice %1 {offsets = [0, 37], sizes = [4, 384], strides = [1, 1]} : vector<4x512xf32> to vector<4x384xf32>
    %c28 = arith.constant 28 : index
    %c0_10 = arith.constant 0 : index
    %17 = vector.load %arg5[%c28, %c0_10] : memref<36x384xf32, #tpu.memory_space<vmem>>, vector<4x384xf32>
    tpu.vector_store %arg5[%c28, %c0_10], %16 {strides = array<i32>} : memref<36x384xf32, #tpu.memory_space<vmem>>, vector<4x384xf32>,
    %18 = vector.extract_strided_slice %1 {offsets = [0, 38], sizes = [4, 384], strides = [1, 1]} : vector<4x512xf32> to vector<4x384xf32>
    %c32 = arith.constant 32 : index
    %c0_11 = arith.constant 0 : index
    %19 = vector.load %arg5[%c32, %c0_11] : memref<36x384xf32, #tpu.memory_space<vmem>>, vector<4x384xf32>
    tpu.vector_store %arg5[%c32, %c0_11], %18 {strides = array<i32>} : memref<36x384xf32, #tpu.memory_space<vmem>>, vector<4x384xf32>,
    %c0_12 = arith.constant 0 : index
    %c0_13 = arith.constant 0 : index
    %20 = vector.load %arg2[%c0_12, %c0_13] : memref<8x36xf32, #tpu.memory_space<vmem>>, vector<8x36xf32>
    %c0_14 = arith.constant 0 : index
    %c0_15 = arith.constant 0 : index
    %21 = vector.load %arg5[%c0_14, %c0_15] : memref<36x384xf32, #tpu.memory_space<vmem>>, vector<36x384xf32>
    %cst = arith.constant dense<0.000000e+00> : vector<8x384xf32>
    %22 = tpu.matmul %20, %21, %cst {dimension_numbers = #tpu.dot_dimension_numbers<[1], [0], [0], [1], [0, 0, 1, 1], [], []>} : vector<8x36xf32>, vector<36x384xf32>, vector<8x384xf32> -> vector<8x384xf32>
    %c0_16 = arith.constant 0 : index
    %c0_17 = arith.constant 0 : index
    %23 = vector.load %arg3[%c0_16, %c0_17] : memref<8x1xf32, #tpu.memory_space<vmem>>, vector<8x1xf32>
    %24 = vector.broadcast %23 : vector<8x1xf32> to vector<8x384xf32>
    %25 = arith.addf %22, %24 : vector<8x384xf32>
    %c0_18 = arith.constant 0 : index
    %c0_19 = arith.constant 0 : index
    %c0_20 = arith.constant 0 : index
    %26 = vector.load %arg4[%c0_18, %c0_19, %c0_20] : memref<1x8x384xf32, #tpu.memory_space<vmem>>, vector<1x8x384xf32>
    %27 = vector.shape_cast %26 : vector<1x8x384xf32> to vector<8x384xf32>
    %28 = vector.shape_cast %25 : vector<8x384xf32> to vector<1x8x384xf32>
    tpu.vector_store %arg4[%c0_18, %c0_19, %c0_20], %28 {strides = array<i32>} : memref<1x8x384xf32, #tpu.memory_space<vmem>>, vector<1x8x384xf32>,
    return
  }
  func.func @transform_0(%arg0: i32) -> (i32, i32, i32) {
    %c0_i32 = arith.constant 0 : i32
    %c0_i32_0 = arith.constant 0 : i32
    %c0_i32_1 = arith.constant 0 : i32
    return %arg0, %c0_i32, %c0_i32_0 : i32, i32, i32
  }
  func.func @transform_1(%arg0: i32) -> (i32, i32) {
    %c0_i32 = arith.constant 0 : i32
    %c0_i32_0 = arith.constant 0 : i32
    %c0_i32_1 = arith.constant 0 : i32
    return %c0_i32, %c0_i32_0 : i32, i32
  }
  func.func @transform_2(%arg0: i32) -> (i32, i32) {
    %c0_i32 = arith.constant 0 : i32
    %c0_i32_0 = arith.constant 0 : i32
    %c0_i32_1 = arith.constant 0 : i32
    return %c0_i32, %c0_i32_0 : i32, i32
  }
  func.func @transform_3(%arg0: i32) -> (i32, i32, i32) {
    %c0_i32 = arith.constant 0 : i32
    %c0_i32_0 = arith.constant 0 : i32
    %c0_i32_1 = arith.constant 0 : i32
    return %arg0, %c0_i32, %c0_i32_0 : i32, i32, i32
  }
}

</mosaic_0001>

<bundles_post_ra>
// kernel: tpu_custom_call.1
= control target key start
LH: loop header
LB: loop body
LE: loop exit
PB: predicated region body
PF: predicated region fallthrough
CT: control target
= control target key end

     0   :  { %8 = vsyncpa [#allocation4], 0  ;;  %s1049_s0 = inlined_call_operand.hbm [shape: f32[2,4,512], index: 0, kind: input, shape index: {}]   ;;  %s1050_s1 = inlined_call_operand.vmem [shape: f32[8,36], index: 1, kind: input, shape index: {}]   ;;  %s1051_s2 = inlined_call_operand.vmem [shape: f32[8,1], index: 2, kind: input, shape index: {}]   ;;  %s1052_s3 = inlined_call_operand.hbm [shape: f32[2,8,384], index: 3, kind: output, shape index: {}]  }
   0x1   :  { %10 = vsyncpa [#allocation4 + $0x1], 0 }
   0x2   :  { %11 = vsyncpa [#allocation5], 0 }
   0x3   :  { %13 = vsyncpa [#allocation5 + $0x1], 0  ;;  %s855_s12 = smov 0   ;;  %s857_s13 = smov 0  }
   0x4   :  { %s859_s14 = smov 0   ;;  %s861_s15 = smov 0  }
   0x5 LB: > { %s876_s16 = sadd.s32 4294967295, %s819_s15   ;;  %s608_s17 = sadd.s32 4294967294, %s819_s15   ;;  %s819_s15 = sphi %s861_s15, %s1067_s15   ;;  %s815_s14 = sphi %s859_s14, %s1066_s14   ;;  %s811_s13 = sphi %s857_s13, %s1065_s13   ;;  %s807_s12 = sphi %s855_s12, %s1064_s12  }
   0x6   : > { %s880_s18 = sadd.s32 1, %s819_s15   ;;  %s26_s19 = sadd.s32 1, %s815_s14 }
   0x7   : > { %s23_s20 = ssub.s32 %s819_s15, %s880_s18  ;;  %p33_p0 = scmp.ne.s32.totalorder %s815_s14, %s811_s13 }
   0x8   : > { %p24_p1 = scmp.eq.s32.totalorder %s23_s20, 0  ;;  %p34_p2 = scmp.eq.s32.totalorder %s819_s15, 0 }
   0x9   : > { %p39_p3 = scmp.ne.s32.totalorder %s811_s13, %s807_s12  ;;  %p40_p4 = scmp.eq.s32.totalorder %s876_s16, 0 }
   0xa   : > { %s892_s21 = scalar_select %p24_p1, %s815_s14, %s26_s19  }
   0xb   : > { %p894_p5 = por %p34_p2, %p33_p0  ;;  %p898_p6 = por %p40_p4, %p39_p3 }
   0xc   : > { %p105_p7 = scmp.eq.s32.totalorder %s876_s16, 1  ;;  %p111_p8 = scmp.eq.s32.totalorder %s608_s17, 1 }
   0xd   : > { %p672_p10 = scmp.lt.s32.totalorder %s819_s15, 2  ;;  %s137_s26 = sand.u32 1, %s815_s14  }
   0xe   : > { %p905_p11 = por %p105_p7, %p33_p0  ;;  %p909_p12 = por %p111_p8, %p39_p3 }
   0xf   : > { %s624_s27 = sshll.u32 %s819_s15, 8  ;;  %s611_s28 = sshll.u32 %s137_s26, 4 }
  0x10   : > { %s1056_s24 = scalar_select %p905_p11, 1, 0 }
  0x11   : > { %s1057_s25 = scalar_select %p909_p12, 1, 0 }
  0x12   : > { %s918_s4 = scalar_lea.hbm %s1049_s0, %s624_s27  ;;  %s141_s5 = scalar_lea.vmem [#allocation3], %s611_s28 }
  0x13   : > { %s149_s6 = sshll.u32 %s141_s5, 4  ;;  %p922_p13 = pnand %p672_p10, %p894_p5  ;;  %s926_s6 = int_to_ptr.vmem [resolvable:$true] %s149_s6 }
  0x14   : > { %s138_s8 = scalar_lea.sflag [#allocation4], %s137_s26  ;;  %s723_s9 = scalar_lea.hbm %s918_s4, 256 }
  0x15   : > { %p724_p2 = scmp.ne.s32.totalorder %s918_s4, %s723_s9  ;;  %p725_p3 = pneg %p922_p13 }
  0x16   : > { %s728_s17 = scalar_lea.hbm %s1049_s0, 512  ;;  %p729_p5 = scmp.lt.u32.totalorder %s918_s4, %s1049_s0 }
  0x17   : > { %p726_p4 = pnand %p725_p3, %p724_p2  ;;  %p730_p8 = scmp.lt.u32.totalorder %s728_s17, %s723_s9 }
  0x18   : > { %p732_p9 = scmp.lt.u32.totalorder %s723_s9, %s918_s4 }
  0x19   : > { %p727_p7 = pneg %p726_p4  ;;  %p731_p10 = por %p730_p8, %p729_p5 }
  0x1b   : > { %p733_p0 = por %p732_p9, %p731_p10 }
  0x1d   : > { %p734_p1 = pnand %p733_p0, %p727_p7 }
  0x1f   : > { %737 = shalt.err (!%p734_p1)
}
  0x20   : > { %s738_s22 = scalar_lea.vmem %s926_s6, 256  ;;  %s821_s26 = smov [#allocation3]  }
  0x21   : > { %p739_p2 = scmp.ne.s32.totalorder %s926_s6, %s738_s22  ;;  %s743_s27 = sshll.u32 %s821_s26, 4  ;;  %s744_s27 = int_to_ptr.vmem [resolvable:$false] %s743_s27 }
  0x22   : > { %s745_s28 = scalar_lea.vmem %s744_s27, 512  ;;  %p746_p11 = scmp.lt.s32.totalorder %s926_s6, %s744_s27 }
  0x23   : > { %p741_p4 = pnand %p739_p2, %p725_p3  ;;  %p747_p5 = scmp.lt.s32.totalorder %s745_s28, %s738_s22 }
  0x25   : > { %p742_p12 = pneg %p741_p4  ;;  %p748_p8 = por %p747_p5, %p746_p11 }
  0x27   : > { %p749_p9 = pnand %p748_p8, %p742_p12 }
  0x29   : > { %752 = shalt.err (!%p749_p9)
}
  0x2a   : > { %667 = dma.hbm_to_vmem [thread:$0]  (!%p922_p13), %s918_s4, 256, %s926_s6, %s138_s8  }
  0x2b   : > { %p1059_p0 = scmp.lt.s32.totalorder %s819_s15, 3  ;;  %p1060_p1 = scmp.ge.s32.totalorder %s819_s15, 1 }
  0x2d   : > { %p155_p3 = pnand %p1060_p1, %p1059_p0 }
  0x2e   : > { %s960_s29 = sand.u32 (!%p155_p3), 1, %s811_s13  }
  0x2f   : > { %158 = sbr.rel (%p155_p3) target bundleno = 470 (0x1d6), region = 32  ;;  %s615_s30 = sshll.u32 (!%p155_p3), %s960_s29, 4 }
  0x30   : > { %s161_s5 = scalar_lea.sflag (!%p155_p3), [#allocation4], %s960_s29  ;;  %s164_s9 = scalar_lea.vmem (!%p155_p3), [#allocation3], %s615_s30 }
  0x36   : > { %798 = dma.done.wait (%p898_p6), %s161_s5, 256  }
  0x37   : > { %800 = vsyncadd (%p898_p6), %s161_s5, 4294967040  ;;  %v188_v0 = vld [vmem:[%s164_s9 + $0x8] sm:$0xff]  ;;  %v187_v1 = vld [vmem:[%s164_s9] sm:$0xff]  ;;  %s822_s4 = smov 126   ;;  %s823_s6 = smov 127   ;;  %v825_v6 = vmov 0.0|0.0  }
  0x38   : > { %221 = vrot.lane.b32.xlu1 %v188_v0, %s822_s4  ;;  %195 = vst [vmem:[#allocation2 + $0x10] sm:$0xf] %v188_v0  ;;  %200 = vrot.lane.b32.xlu0 %v187_v1, %s823_s6  ;;  %193 = vst [vmem:[#allocation2] sm:$0xf] %v187_v1  ;;  %v191_v2 = vcombine.high %v187_v1, %v187_v1  ;;  %s824_s7 = smov 110   ;;  %v197_v3 = vcombine.low %v188_v0, %v188_v0  ;;  %s826_s23 = smov 109  }
  0x39   : > { %v196_v4 = vcombine.low %v187_v1, %v187_v1  ;;  %v216_v5 = vcombine.high %v188_v0, %v188_v0  ;;  %652 = vmatprep.subr.bf16.mxu1 %v825_v6  ;;  %s827_s8 = smov 108   ;;  %s828_s10 = smov 92   ;;  %v830_v7 = vmov 0.0   ;;  %vm832_vm0 = vmmov 0   ;;  %v359_v9 = vld [vmem:[%s1051_s2] sm:$0xff] }
  0x3a   : > { %194 = vst [vmem:[#allocation2 + $0x8] sm:$0xf] %v191_v2  ;;  %s829_s11 = smov 91   ;;  %443 = vmatprep.mubr.f32.mxu0 %v830_v7  ;;  %s831_s17 = smov 90   ;;  %641 = vmatprep.mubr.msk.f32.mxu1 %vm832_vm0, %v830_v7  ;;  %v833_v8 = vmov 0   ;;  %vm225_vm1 = vcmask 1031168  }
  0x3b   : > { %718 = vset.pattern.permute.xlu0 %v833_v8  ;;  %vm206_vm2 = vcmask 1039360   ;;  %vm243_vm3 = vcmask 900096   ;;  %vm261_vm4 = vcmask 891904   ;;  %vm279_vm5 = vcmask 883712   ;;  %s658_s27 = smul.u32 24, %s960_s29  ;;  %p1061_p11 = scmp.ne.s32.totalorder %s1056_s24, 0 }
  0x3c   : > { %237 = vrot.lane.b32.xlu0 %v187_v1, %s824_s7  ;;  %219 = vrot.lane.b32.xlu1 %v191_v2, %s822_s4  ;;  %vm297_vm6 = vcmask 752640   ;;  %vm315_vm7 = vcmask 744448   ;;  %vm333_vm8 = vcmask 736256   ;;  %vm369_vm9 = vcmask 1043456   ;;  %s659_s28 = smul.u32 384, %s876_s16  ;;  %s524_s16 = scalar_lea.sflag [#allocation5], %s960_s29 }
  0x3d   : > { %vm365_vm10 = vcmask 293888   ;;  %s186_s30 = scalar_lea.vmem [#allocation6], %s658_s27 }
  0x3e   : > { %s538_s5 = sshll.u32 %s186_s30, 4  ;;  %s1007_s5 = int_to_ptr.vmem [resolvable:$true] %s538_s5 }
  0x40   : > { %202 = vrot.lane.b32.xlu0 %v197_v3, %s823_s6  ;;  %239 = vrot.lane.b32.xlu1 %v197_v3, %s824_s7 }
  0x44   : > { %198 = vrot.lane.b32.xlu0 %v196_v4, %s823_s6  ;;  %217 = vrot.lane.b32.xlu1 %v187_v1, %s822_s4 }
  0x48   : > { %235 = vrot.lane.b32.xlu0 %v196_v4, %s824_s7  ;;  %204 = vrot.lane.b32.xlu1 %v188_v0, %s823_s6  ;;  %s1005_s6 = scalar_lea.hbm %s1052_s3, %s659_s28 }
  0x4c   : > { %223 = vrot.lane.b32.xlu0 %v216_v5, %s822_s4  ;;  %241 = vrot.lane.b32.xlu1 %v188_v0, %s824_s7  ;;  %s753_s7 = scalar_lea.vmem %s1007_s5, 384 }
  0x4d   : > { %p754_p6 = scmp.ne.s32.totalorder %s1007_s5, %s753_s7 }
  0x4f   : > { %p755_p12 = pnand %p754_p6, %p1061_p11 }
  0x50   : > { %255 = vrot.lane.b32.xlu0 %v191_v2, %s826_s23  ;;  %257 = vrot.lane.b32.xlu1 %v188_v0, %s826_s23 }
  0x51   : > { %p756_p13 = pneg %p755_p12 }
  0x54   : > { %273 = vrot.lane.b32.xlu0 %v187_v1, %s827_s8  ;;  %275 = vrot.lane.b32.xlu1 %v197_v3, %s827_s8 }
  0x58   : > { %291 = vrot.lane.b32.xlu0 %v191_v2, %s828_s10  ;;  %293 = vrot.lane.b32.xlu1 %v188_v0, %s828_s10 }
  0x5c   : > { %309 = vrot.lane.b32.xlu0 %v187_v1, %s829_s11  ;;  %311 = vrot.lane.b32.xlu1 %v197_v3, %s829_s11 }
  0x60   : > { %253 = vrot.lane.b32.xlu0 %v187_v1, %s826_s23  ;;  %271 = vrot.lane.b32.xlu1 %v196_v4, %s827_s8 }
  0x64   : > { %289 = vrot.lane.b32.xlu0 %v187_v1, %s828_s10  ;;  %307 = vrot.lane.b32.xlu1 %v196_v4, %s829_s11 }
  0x68   : > { %259 = vrot.lane.b32.xlu0 %v216_v5, %s826_s23  ;;  %277 = vrot.lane.b32.xlu1 %v188_v0, %s827_s8  ;;  %s834_s23 = smov [#allocation6]  }
  0x69   : > { %s757_s8 = sshll.u32 %s834_s23, 4  ;;  %s758_s8 = int_to_ptr.vmem [resolvable:$false] %s757_s8 }
  0x6a   : > { %p760_p7 = scmp.lt.s32.totalorder %s1007_s5, %s758_s8 }
  0x6c   : > { %295 = vrot.lane.b32.xlu0 %v216_v5, %s828_s10  ;;  %313 = vrot.lane.b32.xlu1 %v188_v0, %s829_s11  ;;  %s759_s10 = scalar_lea.vmem %s758_s8, 768 }
  0x6d   : > { %p761_p10 = scmp.lt.s32.totalorder %s759_s10, %s753_s7 }
  0x6f   : > { %p762_p2 = por %p761_p10, %p760_p7 }
  0x70   : > { %327 = vrot.lane.b32.xlu0 %v191_v2, %s831_s17  ;;  %329 = vrot.lane.b32.xlu1 %v188_v0, %s831_s17 }
  0x71   : > { %p763_p4 = pnand %p762_p2, %p756_p13 }
  0x74   : > { %325 = vrot.lane.b32.xlu0 %v187_v1, %s831_s17  ;;  %331 = vrot.lane.b32.xlu1 %v216_v5, %s831_s17 }
  0x78   : > { %362 = vperm.xlu0 %718, %v359_v9  }
  0xaa   : > { %v222_v10 = vpop.permute.xlu1 %221  ;;  %v201_v11 = vpop.permute.xlu0 %200 }
  0xae   : > { %v238_v12 = vpop.permute.xlu0 %237  ;;  %v220_v13 = vpop.permute.xlu1 %219 }
  0xaf   : > { %v227_v14 = vsel %vm225_vm1, %v220_v13, %v222_v10 }
  0xb0   : > { %233 = vst [vmem:[#allocation2 + $0x20] sm:$0xf] %v227_v14 }
  0xb2   : > { %v203_v15 = vpop.permute.xlu0 %202  ;;  %v240_v16 = vpop.permute.xlu1 %239 }
  0xb3   : > { %v208_v17 = vsel %vm206_vm2, %v201_v11, %v203_v15  ;;  %v245_v18 = vsel %vm243_vm3, %v238_v12, %v240_v16 }
  0xb4   : > { %214 = vst [vmem:[#allocation2 + $0x8] sm:$0xf0] %v208_v17  ;;  %251 = vst [vmem:[#allocation2 + $0x20] sm:$0xf0] %v245_v18 }
  0xb6   : > { %v199_v19 = vpop.permute.xlu0 %198  ;;  %v218_v20 = vpop.permute.xlu1 %217 }
  0xb7   : > { %v207_v21 = vsel %vm206_vm2, %v199_v19, %v201_v11  ;;  %v226_v22 = vsel %vm225_vm1, %v218_v20, %v220_v13 }
  0xb8   : > { %213 = vst [vmem:[#allocation2] sm:$0xf0] %v207_v21  ;;  %232 = vst [vmem:[#allocation2 + $0x18] sm:$0xf] %v226_v22  ;;  %v343_v22 = vld [vmem:[%s1050_s1] sm:$0xff] }
  0xba   : > { %v236_v23 = vpop.permute.xlu0 %235  ;;  %v205_v24 = vpop.permute.xlu1 %204 }
  0xbb   : > { %v244_v25 = vsel %vm243_vm3, %v236_v23, %v238_v12  ;;  %v209_v26 = vsel %vm206_vm2, %v203_v15, %v205_v24  ;;  %v345_v27 = vld [vmem:[#allocation2 + $0x8] sm:$0xff]  ;;  %v348_v28 = vld [vmem:[#allocation2 + $0x20] sm:$0xff] }
  0xbc   : > { %250 = vst [vmem:[#allocation2 + $0x18] sm:$0xf0] %v244_v25  ;;  %215 = vst [vmem:[#allocation2 + $0x10] sm:$0xf0] %v209_v26  ;;  %v644_v29 = vpack.c.bf16 %v348_v28, %v345_v27 }
  0xbe   : > { %v224_v30 = vpop.permute.xlu0 %223  ;;  %v242_v31 = vpop.permute.xlu1 %241  ;;  %645 = vmatprep.subr.bf16.mxu0 %v644_v29 }
  0xbf   : > { %v228_v32 = vsel %vm225_vm1, %v222_v10, %v224_v30  ;;  %v246_v33 = vsel %vm243_vm3, %v240_v16, %v242_v31  ;;  %v344_v37 = vld [vmem:[#allocation2] sm:$0xff] }
  0xc0   : > { %234 = vst [vmem:[#allocation2 + $0x28] sm:$0xf] %v228_v32  ;;  %252 = vst [vmem:[#allocation2 + $0x28] sm:$0xf0] %v246_v33 }
  0xc2   : > { %v256_v34 = vpop.permute.xlu0 %255  ;;  %v258_v35 = vpop.permute.xlu1 %257 }
  0xc3   : > { %v263_v36 = vsel %vm261_vm4, %v256_v34, %v258_v35  ;;  %v347_v38 = vld [vmem:[#allocation2 + $0x18] sm:$0xff]  ;;  %v346_v43 = vld [vmem:[#allocation2 + $0x10] sm:$0xff] }
  0xc4   : > { %269 = vst [vmem:[#allocation2 + $0x38] sm:$0xf] %v263_v36  ;;  %v646_v39 = vpack.c.bf16 %v347_v38, %v344_v37 }
  0xc6   : > { %v274_v40 = vpop.permute.xlu0 %273  ;;  %v276_v41 = vpop.permute.xlu1 %275  ;;  %647 = vmatpush1.bf16.msra.mxu0 %v646_v39 }
  0xc7   : > { %v281_v42 = vsel %vm279_vm5, %v274_v40, %v276_v41  ;;  %v349_v44 = vld [vmem:[#allocation2 + $0x28] sm:$0xff] }
  0xc8   : > { %287 = vst [vmem:[#allocation2 + $0x38] sm:$0xf0] %v281_v42  ;;  %v653_v45 = vpack.c.bf16 %v349_v44, %v346_v43 }
  0xca   : > { %v292_v46 = vpop.permute.xlu0 %291  ;;  %654 = vmatpush3.bf16.msra.mxu1 %v653_v45  ;;  %v294_v47 = vpop.permute.xlu1 %293 }
  0xcb   : > { %v299_v48 = vsel %vm297_vm6, %v292_v46, %v294_v47  ;;  %655 = vmatprep.subr.bf16.mxu1 %v825_v6 }
  0xcc   : > { %305 = vst [vmem:[#allocation2 + $0x50] sm:$0xf] %v299_v48 }
  0xce   : > { %v310_v49 = vpop.permute.xlu0 %309  ;;  %v312_v50 = vpop.permute.xlu1 %311 }
  0xcf   : > { %v317_v51 = vsel %vm315_vm7, %v310_v49, %v312_v50  ;;  %v351_v60 = vld [vmem:[#allocation2 + $0x38] sm:$0xff] }
  0xd0   : > { %323 = vst [vmem:[#allocation2 + $0x50] sm:$0xf0] %v317_v51 }
  0xd2   : > { %v254_v52 = vpop.permute.xlu0 %253  ;;  %v272_v53 = vpop.permute.xlu1 %271 }
  0xd3   : > { %v262_v54 = vsel %vm261_vm4, %v254_v52, %v256_v34  ;;  %v280_v55 = vsel %vm279_vm5, %v272_v53, %v274_v40 }
  0xd4   : > { %268 = vst [vmem:[#allocation2 + $0x30] sm:$0xf] %v262_v54  ;;  %286 = vst [vmem:[#allocation2 + $0x30] sm:$0xf0] %v280_v55 }
  0xd6   : > { %v290_v56 = vpop.permute.xlu0 %289  ;;  %v308_v57 = vpop.permute.xlu1 %307 }
  0xd7   : > { %v298_v58 = vsel %vm297_vm6, %v290_v56, %v292_v46  ;;  %v316_v59 = vsel %vm315_vm7, %v308_v57, %v310_v49  ;;  %v354_v61 = vld [vmem:[#allocation2 + $0x50] sm:$0xff] }
  0xd8   : > { %304 = vst [vmem:[#allocation2 + $0x48] sm:$0xf] %v298_v58  ;;  %322 = vst [vmem:[#allocation2 + $0x48] sm:$0xf0] %v316_v59  ;;  %v648_v62 = vpack.c.bf16 %v354_v61, %v351_v60 }
  0xda   : > { %v260_v63 = vpop.permute.xlu0 %259  ;;  %v278_v0 = vpop.permute.xlu1 %277  ;;  %649 = vmatprep.subr.bf16.mxu0 %v648_v62 }
  0xdb   : > { %v264_v1 = vsel %vm261_vm4, %v258_v35, %v260_v63  ;;  %v282_v2 = vsel %vm279_vm5, %v276_v41, %v278_v0  ;;  %v350_v8 = vld [vmem:[#allocation2 + $0x30] sm:$0xff] }
  0xdc   : > { %270 = vst [vmem:[#allocation2 + $0x40] sm:$0xf] %v264_v1  ;;  %288 = vst [vmem:[#allocation2 + $0x40] sm:$0xf0] %v282_v2 }
  0xde   : > { %v296_v3 = vpop.permute.xlu0 %295  ;;  %v314_v4 = vpop.permute.xlu1 %313 }
  0xdf   : > { %v300_v5 = vsel %vm297_vm6, %v294_v47, %v296_v3  ;;  %v318_v6 = vsel %vm315_vm7, %v312_v50, %v314_v4  ;;  %v353_v9 = vld [vmem:[#allocation2 + $0x48] sm:$0xff] }
  0xe0   : > { %306 = vst [vmem:[#allocation2 + $0x58] sm:$0xf] %v300_v5  ;;  %324 = vst [vmem:[#allocation2 + $0x58] sm:$0xf0] %v318_v6  ;;  %v650_v10 = vpack.c.bf16 %v353_v9, %v350_v8 }
  0xe2   : > { %v328_v11 = vpop.permute.xlu0 %327  ;;  %v330_v12 = vpop.permute.xlu1 %329  ;;  %651 = vmatpush1.bf16.msra.mxu0 %v650_v10 }
  0xe3   : > { %v335_v13 = vsel %vm333_vm8, %v328_v11, %v330_v12  ;;  %v352_v18 = vld [vmem:[#allocation2 + $0x40] sm:$0xff] }
  0xe4   : > { %341 = vst [vmem:[#allocation2 + $0x68] sm:$0xf] %v335_v13 }
  0xe6   : > { %v326_v14 = vpop.permute.xlu0 %325  ;;  %v332_v15 = vpop.permute.xlu1 %331 }
  0xe7   : > { %v334_v16 = vsel %vm333_vm8, %v326_v14, %v328_v11  ;;  %v336_v17 = vsel %vm333_vm8, %v330_v12, %v332_v15  ;;  %v355_v19 = vld [vmem:[#allocation2 + $0x58] sm:$0xff] }
  0xe8   : > { %340 = vst [vmem:[#allocation2 + $0x60] sm:$0xf] %v334_v16  ;;  %342 = vst [vmem:[#allocation2 + $0x70] sm:$0xf] %v336_v17  ;;  %v656_v20 = vpack.c.bf16 %v355_v19, %v352_v18 }
  0xea   : > { %657 = vmatpush3.bf16.msra.mxu1 %v656_v20 }
  0xeb   : > { %v357_v21 = vld [vmem:[#allocation2 + $0x68] sm:$0xf]  ;;  %639 = vmatprep.subr.mxu1 %v830_v7 }
  0xec   : > { %616 = vmatprep.subr.msk.mxu0 %vm369_vm9, %v357_v21 }
  0xef   : > { %v356_v23 = vld [vmem:[#allocation2 + $0x60] sm:$0xf]  ;;  %v358_v24 = vld [vmem:[#allocation2 + $0x70] sm:$0xf] }
  0xf0   : > { %617 = vmatpush1.msk.msra.mxu0 %vm369_vm9, %v356_v23  ;;  %640 = vmatpush3.msk.msra.mxu1 %vm369_vm9, %v358_v24 }
  0xf1   : > { %618 = vmatmul.mubr.msk.f32.vlgmr.msra.gmra.mrb[0].mxu0 %vm365_vm10, %v343_v22  ;;  %642 = vmatmul.mubr.msk.f32.vlgmr.msra.gmra.mrb[0].mxu1 %vm365_vm10, %v343_v22 }
  0xf7   : > { %v363_v25 = vpop.permute.xlu0 %362 }
 0x1c4   : > { %v445_v7 = vpop.f32.mrb[0].mxu0  ;;  %v516_v26 = vpop.f32.mrb[0].mxu1 }
 0x1c5   : > { %v446_v27 = vadd.f32 %v445_v7, %v363_v25  ;;  %v517_v28 = vadd.f32 %v516_v26, %v363_v25  ;;  %v447_v29 = vpop.f32.mrb[1].mxu0  ;;  %v643_v30 = vpop.f32.mrb[1].mxu1 }
 0x1c6   : > { %v448_v31 = vadd.f32 %v447_v29, %v363_v25 }
 0x1c7   : > { %520 = vst [vmem:[%s186_s30] sm:$0xff] %v446_v27  ;;  %522 = vst [vmem:[%s186_s30 + $0x10] sm:$0xff] %v517_v28 }
 0x1c8   : > { %521 = vst [vmem:[%s186_s30 + $0x8] sm:$0xff] %v448_v31 }
 0x1c9   : > { %766 = shalt.err (!%p763_p4)
}
 0x1ca   : > { %s767_s29 = scalar_lea.hbm %s1005_s6, 384  ;;  %s771_s19 = scalar_lea.hbm %s1052_s3, 768 }
 0x1cb   : > { %p768_p5 = scmp.ne.s32.totalorder %s1005_s6, %s767_s29  ;;  %p772_p0 = scmp.lt.u32.totalorder %s1005_s6, %s1052_s3 }
 0x1cc   : > { %p773_p1 = scmp.lt.u32.totalorder %s771_s19, %s767_s29  ;;  %p775_p6 = scmp.lt.u32.totalorder %s767_s29, %s1005_s6 }
 0x1cd   : > { %p769_p8 = pnand %p768_p5, %p1061_p11 }
 0x1ce   : > { %p774_p3 = por %p773_p1, %p772_p0 }
 0x1cf   : > { %p770_p9 = pneg %p769_p8 }
 0x1d0   : > { %p776_p12 = por %p775_p6, %p774_p3 }
 0x1d2   : > { %p777_p13 = pnand %p776_p12, %p770_p9 }
 0x1d4   : > { %780 = shalt.err (!%p777_p13)
}
 0x1d5   : > { %662 = dma.vmem_to_hbm [thread:$0]  (%p1061_p11), %s1007_s5, 384, %s1005_s6, %s524_s16  }
 0x1d6 PF: > { %s550_s26 = sand.u32 1, %s807_s12   ;;  %p1062_p7 = scmp.ne.s32.totalorder %s1057_s25, 0 }
 0x1d7   : > { %p1063_p10 = scmp.ge.s32.totalorder %s819_s15, 2  ;;  %s551_s27 = scalar_lea.sflag [#allocation5], %s550_s26 }
 0x1d9   : > { %p669_p2 = pnand %p1063_p10, %p1062_p7 }
 0x1db   : > { %802 = dma.done.wait (!%p669_p2), %s551_s27, 384  }
 0x1dc   : > { %804 = vsyncadd (!%p669_p2), %s551_s27, 4294966912  ;;  %p16_p4 = scmp.ge.s32.totalorder %s880_s18, 4   ;;  %s1064_s12 = smov %s811_s13 }
 0x1dd   : > { %s1065_s13 = smov %s815_s14  ;;  %s1066_s14 = smov %s892_s21 }
 0x1de   : > { %s1067_s15 = smov %s880_s18  ;;  %18 = sbr.rel (!%p16_p4) target bundleno = 5 (0x5), region = 77 }
 0x1e5   :  { %556 = vsyncpa [#allocation4], 1 }
 0x1e6   :  { %558 = vsyncpa [#allocation4 + $0x1], 1 }
 0x1e7   :  { %559 = vsyncpa [#allocation5], 1 }
 0x1e8   :  { %561 = vsyncpa [#allocation5 + $0x1], 1 }

</bundles_post_ra>
